<compile_context>
chip_gen: v6e
topology: v6e:2x2x1
jax: 0.10.0
libtpu: 0.0.40
codegen_flags: <defaults>
</compile_context>

<pallas_src>
import jax
import jax.numpy as jnp
from jax.experimental import pallas as pl
from jax.experimental.pallas import tpu as pltpu


# --------------------- fused Embedding + LSTM + FC kernel --------------------
def fused_forward(x_ids, h0, c0, emb_wih, w_hh_t, bias, w_fc_pad, b_fc_pad):
    """x_ids: (N, 1) int32 (N = S*B, time-major); h0/c0: (B, H);
    emb_wih: (D, 4H) = embedding @ W_ih^T; w_hh_t: (H, 4H); bias: (1, 4H);
    w_fc_pad: (H, Dp) lane-padded FC weight (Dp multiple of 128); b_fc_pad: (1, Dp).

    Returns a single lane-dense slab of shape (N + B, Dp):
      rows [0:N]       -> fc(lstm_outputs)        (valid columns: [:D])
      rows [N:N+B]     -> [hN | cN | zero-pad]    (columns [0:H] and [H:2H])
    """
    N = x_ids.shape[0]
    D, H4 = emb_wih.shape
    H = h0.shape[1]
    B = h0.shape[0]
    S = N // B
    Dp = w_fc_pad.shape[1]
    assert H4 == 4 * H and N == S * B and 2 * H <= Dp and Dp % 128 == 0

    def kernel(x_ref, h0_ref, c0_ref, ew_ref, whh_ref, b_ref,
               wfc_ref, bfc_ref, out_ref, hs_ref):
        # ---- Embedding lookup + input projection fused into ONE MXU matmul:
        #      onehot @ (emb @ W_ih^T) + (b_ih + b_hh), for ALL time steps.
        ids = x_ref[...]                                          # (N, 1) int32
        onehot = (ids == jax.lax.broadcasted_iota(jnp.int32, (N, D), 1)
                  ).astype(jnp.float32)                           # (N, D)
        xp = (jnp.dot(onehot, ew_ref[...],
                      preferred_element_type=jnp.float32)
              + b_ref[...])                                       # (N, 4H)

        # ---- LSTM recurrence, fully unrolled (S small & static).  Only the
        #      recurrent h @ W_hh^T matmul lives inside the loop.
        whh = whh_ref[...]                                        # (H, 4H)
        h = h0_ref[...].astype(jnp.float32)                       # (B, H)
        c = c0_ref[...].astype(jnp.float32)                       # (B, H)
        for t in range(S):
            g = xp[t * B:(t + 1) * B, :] + jnp.dot(
                h, whh, preferred_element_type=jnp.float32)       # (B, 4H) i,f,g,o
            # Full-vreg activations (2 EUP pushes), then slice the gate groups.
            sig = jax.nn.sigmoid(g)
            th = jnp.tanh(g)
            i_g = sig[:, 0 * H:1 * H]
            f_g = sig[:, 1 * H:2 * H]
            g_g = th[:, 2 * H:3 * H]
            o_g = sig[:, 3 * H:4 * H]
            c = f_g * c + i_g * g_g
            h = o_g * jnp.tanh(c)
            hs_ref[t * B:(t + 1) * B, :] = h        # sublane-aligned scratch write

        # ---- Final Linear on all time steps at once: one (N,H)x(H,Dp) matmul,
        #      lane-dense (128-wide) unmasked stores of the whole output slab.
        out_ref[0:N, :] = (jnp.dot(hs_ref[...], wfc_ref[...],
                                   preferred_element_type=jnp.float32)
                           + bfc_ref[...])
        # Pack final (hN, cN) into the last B rows of the same 128-lane slab.
        pad_w = Dp - 2 * H
        parts = [h, c]
        if pad_w > 0:
            parts.append(jnp.zeros((B, pad_w), jnp.float32))
        out_ref[N:N + B, :] = jnp.concatenate(parts, axis=1)

    vmem = pl.BlockSpec(memory_space=pltpu.MemorySpace.VMEM)
    slab = pl.pallas_call(
        kernel,
        out_shape=jax.ShapeDtypeStruct((N + B, Dp), jnp.float32),
        in_specs=[vmem] * 8,
        out_specs=vmem,
        scratch_shapes=[pltpu.VMEM((N, H), jnp.float32)],
    )(x_ids, h0, c0, emb_wih, w_hh_t, bias, w_fc_pad, b_fc_pad)
    return slab


# ------------------------------ parameters -----------------------------------
def init_params(key, dictionary_size, embedding_size, max_init_param=0.01):
    """Raw PyTorch-shaped parameters (all uniform(-max_init_param, +max_init_param))."""
    H, D = embedding_size, dictionary_size
    ks = jax.random.split(key, 7)
    u = lambda k, shape: jax.random.uniform(
        k, shape, jnp.float32, -max_init_param, max_init_param)
    return {
        "embedding": u(ks[0], (D, H)),          # nn.Embedding(D, H)
        "w_ih": u(ks[1], (4 * H, H)),           # nn.LSTM weight_ih_l0
        "w_hh": u(ks[2], (4 * H, H)),           # nn.LSTM weight_hh_l0
        "b_ih": u(ks[3], (4 * H,)),
        "b_hh": u(ks[4], (4 * H,)),
        "w_fc": u(ks[5], (D, H)),               # nn.Linear(H, D)
        "b_fc": u(ks[6], (D,)),
    }


def prepare_params(params):
    """One-time prep (outside the jitted forward):
    fold embedding into W_ih, transpose weights, fuse LSTM biases, and
    zero-pad the FC projection to a 128-lane-dense output width."""
    D, H = params["embedding"].shape
    Dp = max(128, ((D + 127) // 128) * 128)     # lane-dense padded output width

    emb_wih = params["embedding"] @ params["w_ih"].T                # (D, 4H)
    w_hh_t = params["w_hh"].T                                       # (H, 4H)
    bias = (params["b_ih"] + params["b_hh"]).reshape(1, -1)         # (1, 4H)

    w_fc_pad = jnp.zeros((H, Dp), jnp.float32).at[:, :D].set(params["w_fc"].T)
    b_fc_pad = jnp.zeros((1, Dp), jnp.float32).at[:, :D].set(
        params["b_fc"].reshape(1, -1))

    return {
        "emb_wih": emb_wih,        # (D, 4H)
        "w_hh_t": w_hh_t,          # (H, 4H)
        "bias": bias,              # (1, 4H)
        "w_fc_pad": w_fc_pad,      # (H, Dp)
        "b_fc_pad": b_fc_pad,      # (1, Dp)
    }


# ------------------------------ full forward ---------------------------------
@jax.jit
def model_forward(prepped, X, states):
    """X: (S, B) int token ids (seq-major, like torch batch_first=False);
    states: (h0, c0), each (1, B, H).
    Returns (output (S, B, D), (hN, cN)) matching the PyTorch Model.forward."""
    h0, c0 = states
    S, B = X.shape
    D = prepped["emb_wih"].shape[0]
    H = h0.shape[-1]
    N = S * B

    slab = fused_forward(
        X.astype(jnp.int32).reshape(N, 1), h0[0], c0[0],
        prepped["emb_wih"], prepped["w_hh_t"], prepped["bias"],
        prepped["w_fc_pad"], prepped["b_fc_pad"])

    output = slab[:N, :D].reshape(S, B, D)     # drop zero padding lanes
    hN = slab[N:, :H]
    cN = slab[N:, H:2 * H]
    return output, (hN[None], cN[None])


if __name__ == "__main__":
    dictionary_size = 64
    embedding_size = 32
    seq_len = 8
    batch = 8

    key = jax.random.PRNGKey(0)
    pkey, xkey = jax.random.split(key)
    params = init_params(pkey, dictionary_size, embedding_size)
    prepped = prepare_params(params)

    X = jax.random.randint(xkey, (seq_len, batch), 0, dictionary_size, jnp.int32)
    h0 = jnp.zeros((1, batch, embedding_size), jnp.float32)
    c0 = jnp.zeros((1, batch, embedding_size), jnp.float32)

    output, (hN, cN) = model_forward(prepped, X, (h0, c0))
    jax.block_until_ready((output, hN, cN))

    assert output.shape == (seq_len, batch, dictionary_size)
    assert hN.shape == (1, batch, embedding_size)
    assert cN.shape == (1, batch, embedding_size)
    assert bool(jnp.all(jnp.isfinite(output)))
    assert bool(jnp.all(jnp.isfinite(hN))) and bool(jnp.all(jnp.isfinite(cN)))
    print("KERNEL_OK")
</pallas_src>

<mosaic_0001>
module attributes {stable_mosaic.version = 11 : i64} {
  func.func @kernel(%arg0: memref<64x1xi32, #tpu.memory_space<vmem>>, %arg1: memref<8x32xf32, #tpu.memory_space<vmem>>, %arg2: memref<8x32xf32, #tpu.memory_space<vmem>>, %arg3: memref<64x128xf32, #tpu.memory_space<vmem>>, %arg4: memref<32x128xf32, #tpu.memory_space<vmem>>, %arg5: memref<1x128xf32, #tpu.memory_space<vmem>>, %arg6: memref<32x128xf32, #tpu.memory_space<vmem>>, %arg7: memref<1x128xf32, #tpu.memory_space<vmem>>, %arg8: memref<72x128xf32, #tpu.memory_space<vmem>>, %arg9: memref<64x32xf32, #tpu.memory_space<vmem>>) attributes {dimension_semantics = [], scalar_prefetch = 0 : i64, scratch_operands = 1 : i64, tpu.core_type = #tpu.core_type<tc>} {
    %c0 = arith.constant 0 : index
    %c0_0 = arith.constant 0 : index
    %0 = vector.load %arg0[%c0, %c0_0] : memref<64x1xi32, #tpu.memory_space<vmem>>, vector<64x1xi32>
    %1 = tpu.iota {dimensions = array<i32: 1>} : vector<64x64xi32>
    %2 = vector.broadcast %0 : vector<64x1xi32> to vector<64x64xi32>
    %3 = arith.cmpi eq, %2, %1 : vector<64x64xi32>
    %4 = arith.extui %3 : vector<64x64xi1> to vector<64x64xi32>
    %5 = arith.sitofp %4 : vector<64x64xi32> to vector<64x64xf32>
    %c0_1 = arith.constant 0 : index
    %c0_2 = arith.constant 0 : index
    %6 = vector.load %arg3[%c0_1, %c0_2] : memref<64x128xf32, #tpu.memory_space<vmem>>, vector<64x128xf32>
    %cst = arith.constant dense<0.000000e+00> : vector<64x128xf32>
    %7 = tpu.matmul %5, %6, %cst {dimension_numbers = #tpu.dot_dimension_numbers<[1], [0], [0], [1], [0, 0, 1, 1], [], []>} : vector<64x64xf32>, vector<64x128xf32>, vector<64x128xf32> -> vector<64x128xf32>
    %c0_3 = arith.constant 0 : index
    %c0_4 = arith.constant 0 : index
    %8 = vector.load %arg5[%c0_3, %c0_4] : memref<1x128xf32, #tpu.memory_space<vmem>>, vector<1x128xf32>
    %9 = vector.broadcast %8 : vector<1x128xf32> to vector<64x128xf32>
    %10 = arith.addf %7, %9 : vector<64x128xf32>
    %c0_5 = arith.constant 0 : index
    %c0_6 = arith.constant 0 : index
    %11 = vector.load %arg4[%c0_5, %c0_6] : memref<32x128xf32, #tpu.memory_space<vmem>>, vector<32x128xf32>
    %c0_7 = arith.constant 0 : index
    %c0_8 = arith.constant 0 : index
    %12 = vector.load %arg1[%c0_7, %c0_8] : memref<8x32xf32, #tpu.memory_space<vmem>>, vector<8x32xf32>
    %c0_9 = arith.constant 0 : index
    %c0_10 = arith.constant 0 : index
    %13 = vector.load %arg2[%c0_9, %c0_10] : memref<8x32xf32, #tpu.memory_space<vmem>>, vector<8x32xf32>
    %14 = vector.extract_strided_slice %10 {offsets = [0, 0], sizes = [8, 128], strides = [1, 1]} : vector<64x128xf32> to vector<8x128xf32>
    %cst_11 = arith.constant dense<0.000000e+00> : vector<8x128xf32>
    %15 = tpu.matmul %12, %11, %cst_11 {dimension_numbers = #tpu.dot_dimension_numbers<[1], [0], [0], [1], [0, 0, 1, 1], [], []>} : vector<8x32xf32>, vector<32x128xf32>, vector<8x128xf32> -> vector<8x128xf32>
    %16 = arith.addf %14, %15 : vector<8x128xf32>
    %17 = arith.negf %16 : vector<8x128xf32>
    %18 = math.exp %17 : vector<8x128xf32>
    %cst_12 = arith.constant 1.000000e+00 : f32
    %19 = vector.broadcast %cst_12 : f32 to vector<8x128xf32>
    %20 = arith.addf %19, %18 : vector<8x128xf32>
    %21 = arith.divf %19, %20 : vector<8x128xf32>
    %22 = math.tanh %16 : vector<8x128xf32>
    %23 = vector.extract_strided_slice %21 {offsets = [0, 0], sizes = [8, 32], strides = [1, 1]} : vector<8x128xf32> to vector<8x32xf32>
    %24 = vector.extract_strided_slice %21 {offsets = [0, 32], sizes = [8, 32], strides = [1, 1]} : vector<8x128xf32> to vector<8x32xf32>
    %25 = vector.extract_strided_slice %22 {offsets = [0, 64], sizes = [8, 32], strides = [1, 1]} : vector<8x128xf32> to vector<8x32xf32>
    %26 = vector.extract_strided_slice %21 {offsets = [0, 96], sizes = [8, 32], strides = [1, 1]} : vector<8x128xf32> to vector<8x32xf32>
    %27 = arith.mulf %24, %13 : vector<8x32xf32>
    %28 = arith.mulf %23, %25 : vector<8x32xf32>
    %29 = arith.addf %27, %28 : vector<8x32xf32>
    %30 = math.tanh %29 : vector<8x32xf32>
    %31 = arith.mulf %26, %30 : vector<8x32xf32>
    %c0_13 = arith.constant 0 : index
    %c0_14 = arith.constant 0 : index
    %32 = vector.load %arg9[%c0_13, %c0_14] : memref<64x32xf32, #tpu.memory_space<vmem>>, vector<8x32xf32>
    tpu.vector_store %arg9[%c0_13, %c0_14], %31 {strides = array<i32>} : memref<64x32xf32, #tpu.memory_space<vmem>>, vector<8x32xf32>,
    %33 = vector.extract_strided_slice %10 {offsets = [8, 0], sizes = [8, 128], strides = [1, 1]} : vector<64x128xf32> to vector<8x128xf32>
    %cst_15 = arith.constant dense<0.000000e+00> : vector<8x128xf32>
    %34 = tpu.matmul %31, %11, %cst_15 {dimension_numbers = #tpu.dot_dimension_numbers<[1], [0], [0], [1], [0, 0, 1, 1], [], []>} : vector<8x32xf32>, vector<32x128xf32>, vector<8x128xf32> -> vector<8x128xf32>
    %35 = arith.addf %33, %34 : vector<8x128xf32>
    %36 = arith.negf %35 : vector<8x128xf32>
    %37 = math.exp %36 : vector<8x128xf32>
    %cst_16 = arith.constant 1.000000e+00 : f32
    %38 = vector.broadcast %cst_16 : f32 to vector<8x128xf32>
    %39 = arith.addf %38, %37 : vector<8x128xf32>
    %40 = arith.divf %38, %39 : vector<8x128xf32>
    %41 = math.tanh %35 : vector<8x128xf32>
    %42 = vector.extract_strided_slice %40 {offsets = [0, 0], sizes = [8, 32], strides = [1, 1]} : vector<8x128xf32> to vector<8x32xf32>
    %43 = vector.extract_strided_slice %40 {offsets = [0, 32], sizes = [8, 32], strides = [1, 1]} : vector<8x128xf32> to vector<8x32xf32>
    %44 = vector.extract_strided_slice %41 {offsets = [0, 64], sizes = [8, 32], strides = [1, 1]} : vector<8x128xf32> to vector<8x32xf32>
    %45 = vector.extract_strided_slice %40 {offsets = [0, 96], sizes = [8, 32], strides = [1, 1]} : vector<8x128xf32> to vector<8x32xf32>
    %46 = arith.mulf %43, %29 : vector<8x32xf32>
    %47 = arith.mulf %42, %44 : vector<8x32xf32>
    %48 = arith.addf %46, %47 : vector<8x32xf32>
    %49 = math.tanh %48 : vector<8x32xf32>
    %50 = arith.mulf %45, %49 : vector<8x32xf32>
    %c8 = arith.constant 8 : index
    %c0_17 = arith.constant 0 : index
    %51 = vector.load %arg9[%c8, %c0_17] : memref<64x32xf32, #tpu.memory_space<vmem>>, vector<8x32xf32>
    tpu.vector_store %arg9[%c8, %c0_17], %50 {strides = array<i32>} : memref<64x32xf32, #tpu.memory_space<vmem>>, vector<8x32xf32>,
    %52 = vector.extract_strided_slice %10 {offsets = [16, 0], sizes = [8, 128], strides = [1, 1]} : vector<64x128xf32> to vector<8x128xf32>
    %cst_18 = arith.constant dense<0.000000e+00> : vector<8x128xf32>
    %53 = tpu.matmul %50, %11, %cst_18 {dimension_numbers = #tpu.dot_dimension_numbers<[1], [0], [0], [1], [0, 0, 1, 1], [], []>} : vector<8x32xf32>, vector<32x128xf32>, vector<8x128xf32> -> vector<8x128xf32>
    %54 = arith.addf %52, %53 : vector<8x128xf32>
    %55 = arith.negf %54 : vector<8x128xf32>
    %56 = math.exp %55 : vector<8x128xf32>
    %cst_19 = arith.constant 1.000000e+00 : f32
    %57 = vector.broadcast %cst_19 : f32 to vector<8x128xf32>
    %58 = arith.addf %57, %56 : vector<8x128xf32>
    %59 = arith.divf %57, %58 : vector<8x128xf32>
    %60 = math.tanh %54 : vector<8x128xf32>
    %61 = vector.extract_strided_slice %59 {offsets = [0, 0], sizes = [8, 32], strides = [1, 1]} : vector<8x128xf32> to vector<8x32xf32>
    %62 = vector.extract_strided_slice %59 {offsets = [0, 32], sizes = [8, 32], strides = [1, 1]} : vector<8x128xf32> to vector<8x32xf32>
    %63 = vector.extract_strided_slice %60 {offsets = [0, 64], sizes = [8, 32], strides = [1, 1]} : vector<8x128xf32> to vector<8x32xf32>
    %64 = vector.extract_strided_slice %59 {offsets = [0, 96], sizes = [8, 32], strides = [1, 1]} : vector<8x128xf32> to vector<8x32xf32>
    %65 = arith.mulf %62, %48 : vector<8x32xf32>
    %66 = arith.mulf %61, %63 : vector<8x32xf32>
    %67 = arith.addf %65, %66 : vector<8x32xf32>
    %68 = math.tanh %67 : vector<8x32xf32>
    %69 = arith.mulf %64, %68 : vector<8x32xf32>
    %c16 = arith.constant 16 : index
    %c0_20 = arith.constant 0 : index
    %70 = vector.load %arg9[%c16, %c0_20] : memref<64x32xf32, #tpu.memory_space<vmem>>, vector<8x32xf32>
    tpu.vector_store %arg9[%c16, %c0_20], %69 {strides = array<i32>} : memref<64x32xf32, #tpu.memory_space<vmem>>, vector<8x32xf32>,
    %71 = vector.extract_strided_slice %10 {offsets = [24, 0], sizes = [8, 128], strides = [1, 1]} : vector<64x128xf32> to vector<8x128xf32>
    %cst_21 = arith.constant dense<0.000000e+00> : vector<8x128xf32>
    %72 = tpu.matmul %69, %11, %cst_21 {dimension_numbers = #tpu.dot_dimension_numbers<[1], [0], [0], [1], [0, 0, 1, 1], [], []>} : vector<8x32xf32>, vector<32x128xf32>, vector<8x128xf32> -> vector<8x128xf32>
    %73 = arith.addf %71, %72 : vector<8x128xf32>
    %74 = arith.negf %73 : vector<8x128xf32>
    %75 = math.exp %74 : vector<8x128xf32>
    %cst_22 = arith.constant 1.000000e+00 : f32
    %76 = vector.broadcast %cst_22 : f32 to vector<8x128xf32>
    %77 = arith.addf %76, %75 : vector<8x128xf32>
    %78 = arith.divf %76, %77 : vector<8x128xf32>
    %79 = math.tanh %73 : vector<8x128xf32>
    %80 = vector.extract_strided_slice %78 {offsets = [0, 0], sizes = [8, 32], strides = [1, 1]} : vector<8x128xf32> to vector<8x32xf32>
    %81 = vector.extract_strided_slice %78 {offsets = [0, 32], sizes = [8, 32], strides = [1, 1]} : vector<8x128xf32> to vector<8x32xf32>
    %82 = vector.extract_strided_slice %79 {offsets = [0, 64], sizes = [8, 32], strides = [1, 1]} : vector<8x128xf32> to vector<8x32xf32>
    %83 = vector.extract_strided_slice %78 {offsets = [0, 96], sizes = [8, 32], strides = [1, 1]} : vector<8x128xf32> to vector<8x32xf32>
    %84 = arith.mulf %81, %67 : vector<8x32xf32>
    %85 = arith.mulf %80, %82 : vector<8x32xf32>
    %86 = arith.addf %84, %85 : vector<8x32xf32>
    %87 = math.tanh %86 : vector<8x32xf32>
    %88 = arith.mulf %83, %87 : vector<8x32xf32>
    %c24 = arith.constant 24 : index
    %c0_23 = arith.constant 0 : index
    %89 = vector.load %arg9[%c24, %c0_23] : memref<64x32xf32, #tpu.memory_space<vmem>>, vector<8x32xf32>
    tpu.vector_store %arg9[%c24, %c0_23], %88 {strides = array<i32>} : memref<64x32xf32, #tpu.memory_space<vmem>>, vector<8x32xf32>,
    %90 = vector.extract_strided_slice %10 {offsets = [32, 0], sizes = [8, 128], strides = [1, 1]} : vector<64x128xf32> to vector<8x128xf32>
    %cst_24 = arith.constant dense<0.000000e+00> : vector<8x128xf32>
    %91 = tpu.matmul %88, %11, %cst_24 {dimension_numbers = #tpu.dot_dimension_numbers<[1], [0], [0], [1], [0, 0, 1, 1], [], []>} : vector<8x32xf32>, vector<32x128xf32>, vector<8x128xf32> -> vector<8x128xf32>
    %92 = arith.addf %90, %91 : vector<8x128xf32>
    %93 = arith.negf %92 : vector<8x128xf32>
    %94 = math.exp %93 : vector<8x128xf32>
    %cst_25 = arith.constant 1.000000e+00 : f32
    %95 = vector.broadcast %cst_25 : f32 to vector<8x128xf32>
    %96 = arith.addf %95, %94 : vector<8x128xf32>
    %97 = arith.divf %95, %96 : vector<8x128xf32>
    %98 = math.tanh %92 : vector<8x128xf32>
    %99 = vector.extract_strided_slice %97 {offsets = [0, 0], sizes = [8, 32], strides = [1, 1]} : vector<8x128xf32> to vector<8x32xf32>
    %100 = vector.extract_strided_slice %97 {offsets = [0, 32], sizes = [8, 32], strides = [1, 1]} : vector<8x128xf32> to vector<8x32xf32>
    %101 = vector.extract_strided_slice %98 {offsets = [0, 64], sizes = [8, 32], strides = [1, 1]} : vector<8x128xf32> to vector<8x32xf32>
    %102 = vector.extract_strided_slice %97 {offsets = [0, 96], sizes = [8, 32], strides = [1, 1]} : vector<8x128xf32> to vector<8x32xf32>
    %103 = arith.mulf %100, %86 : vector<8x32xf32>
    %104 = arith.mulf %99, %101 : vector<8x32xf32>
    %105 = arith.addf %103, %104 : vector<8x32xf32>
    %106 = math.tanh %105 : vector<8x32xf32>
    %107 = arith.mulf %102, %106 : vector<8x32xf32>
    %c32 = arith.constant 32 : index
    %c0_26 = arith.constant 0 : index
    %108 = vector.load %arg9[%c32, %c0_26] : memref<64x32xf32, #tpu.memory_space<vmem>>, vector<8x32xf32>
    tpu.vector_store %arg9[%c32, %c0_26], %107 {strides = array<i32>} : memref<64x32xf32, #tpu.memory_space<vmem>>, vector<8x32xf32>,
    %109 = vector.extract_strided_slice %10 {offsets = [40, 0], sizes = [8, 128], strides = [1, 1]} : vector<64x128xf32> to vector<8x128xf32>
    %cst_27 = arith.constant dense<0.000000e+00> : vector<8x128xf32>
    %110 = tpu.matmul %107, %11, %cst_27 {dimension_numbers = #tpu.dot_dimension_numbers<[1], [0], [0], [1], [0, 0, 1, 1], [], []>} : vector<8x32xf32>, vector<32x128xf32>, vector<8x128xf32> -> vector<8x128xf32>
    %111 = arith.addf %109, %110 : vector<8x128xf32>
    %112 = arith.negf %111 : vector<8x128xf32>
    %113 = math.exp %112 : vector<8x128xf32>
    %cst_28 = arith.constant 1.000000e+00 : f32
    %114 = vector.broadcast %cst_28 : f32 to vector<8x128xf32>
    %115 = arith.addf %114, %113 : vector<8x128xf32>
    %116 = arith.divf %114, %115 : vector<8x128xf32>
    %117 = math.tanh %111 : vector<8x128xf32>
    %118 = vector.extract_strided_slice %116 {offsets = [0, 0], sizes = [8, 32], strides = [1, 1]} : vector<8x128xf32> to vector<8x32xf32>
    %119 = vector.extract_strided_slice %116 {offsets = [0, 32], sizes = [8, 32], strides = [1, 1]} : vector<8x128xf32> to vector<8x32xf32>
    %120 = vector.extract_strided_slice %117 {offsets = [0, 64], sizes = [8, 32], strides = [1, 1]} : vector<8x128xf32> to vector<8x32xf32>
    %121 = vector.extract_strided_slice %116 {offsets = [0, 96], sizes = [8, 32], strides = [1, 1]} : vector<8x128xf32> to vector<8x32xf32>
    %122 = arith.mulf %119, %105 : vector<8x32xf32>
    %123 = arith.mulf %118, %120 : vector<8x32xf32>
    %124 = arith.addf %122, %123 : vector<8x32xf32>
    %125 = math.tanh %124 : vector<8x32xf32>
    %126 = arith.mulf %121, %125 : vector<8x32xf32>
    %c40 = arith.constant 40 : index
    %c0_29 = arith.constant 0 : index
    %127 = vector.load %arg9[%c40, %c0_29] : memref<64x32xf32, #tpu.memory_space<vmem>>, vector<8x32xf32>
    tpu.vector_store %arg9[%c40, %c0_29], %126 {strides = array<i32>} : memref<64x32xf32, #tpu.memory_space<vmem>>, vector<8x32xf32>,
    %128 = vector.extract_strided_slice %10 {offsets = [48, 0], sizes = [8, 128], strides = [1, 1]} : vector<64x128xf32> to vector<8x128xf32>
    %cst_30 = arith.constant dense<0.000000e+00> : vector<8x128xf32>
    %129 = tpu.matmul %126, %11, %cst_30 {dimension_numbers = #tpu.dot_dimension_numbers<[1], [0], [0], [1], [0, 0, 1, 1], [], []>} : vector<8x32xf32>, vector<32x128xf32>, vector<8x128xf32> -> vector<8x128xf32>
    %130 = arith.addf %128, %129 : vector<8x128xf32>
    %131 = arith.negf %130 : vector<8x128xf32>
    %132 = math.exp %131 : vector<8x128xf32>
    %cst_31 = arith.constant 1.000000e+00 : f32
    %133 = vector.broadcast %cst_31 : f32 to vector<8x128xf32>
    %134 = arith.addf %133, %132 : vector<8x128xf32>
    %135 = arith.divf %133, %134 : vector<8x128xf32>
    %136 = math.tanh %130 : vector<8x128xf32>
    %137 = vector.extract_strided_slice %135 {offsets = [0, 0], sizes = [8, 32], strides = [1, 1]} : vector<8x128xf32> to vector<8x32xf32>
    %138 = vector.extract_strided_slice %135 {offsets = [0, 32], sizes = [8, 32], strides = [1, 1]} : vector<8x128xf32> to vector<8x32xf32>
    %139 = vector.extract_strided_slice %136 {offsets = [0, 64], sizes = [8, 32], strides = [1, 1]} : vector<8x128xf32> to vector<8x32xf32>
    %140 = vector.extract_strided_slice %135 {offsets = [0, 96], sizes = [8, 32], strides = [1, 1]} : vector<8x128xf32> to vector<8x32xf32>
    %141 = arith.mulf %138, %124 : vector<8x32xf32>
    %142 = arith.mulf %137, %139 : vector<8x32xf32>
    %143 = arith.addf %141, %142 : vector<8x32xf32>
    %144 = math.tanh %143 : vector<8x32xf32>
    %145 = arith.mulf %140, %144 : vector<8x32xf32>
    %c48 = arith.constant 48 : index
    %c0_32 = arith.constant 0 : index
    %146 = vector.load %arg9[%c48, %c0_32] : memref<64x32xf32, #tpu.memory_space<vmem>>, vector<8x32xf32>
    tpu.vector_store %arg9[%c48, %c0_32], %145 {strides = array<i32>} : memref<64x32xf32, #tpu.memory_space<vmem>>, vector<8x32xf32>,
    %147 = vector.extract_strided_slice %10 {offsets = [56, 0], sizes = [8, 128], strides = [1, 1]} : vector<64x128xf32> to vector<8x128xf32>
    %cst_33 = arith.constant dense<0.000000e+00> : vector<8x128xf32>
    %148 = tpu.matmul %145, %11, %cst_33 {dimension_numbers = #tpu.dot_dimension_numbers<[1], [0], [0], [1], [0, 0, 1, 1], [], []>} : vector<8x32xf32>, vector<32x128xf32>, vector<8x128xf32> -> vector<8x128xf32>
    %149 = arith.addf %147, %148 : vector<8x128xf32>
    %150 = arith.negf %149 : vector<8x128xf32>
    %151 = math.exp %150 : vector<8x128xf32>
    %cst_34 = arith.constant 1.000000e+00 : f32
    %152 = vector.broadcast %cst_34 : f32 to vector<8x128xf32>
    %153 = arith.addf %152, %151 : vector<8x128xf32>
    %154 = arith.divf %152, %153 : vector<8x128xf32>
    %155 = math.tanh %149 : vector<8x128xf32>
    %156 = vector.extract_strided_slice %154 {offsets = [0, 0], sizes = [8, 32], strides = [1, 1]} : vector<8x128xf32> to vector<8x32xf32>
    %157 = vector.extract_strided_slice %154 {offsets = [0, 32], sizes = [8, 32], strides = [1, 1]} : vector<8x128xf32> to vector<8x32xf32>
    %158 = vector.extract_strided_slice %155 {offsets = [0, 64], sizes = [8, 32], strides = [1, 1]} : vector<8x128xf32> to vector<8x32xf32>
    %159 = vector.extract_strided_slice %154 {offsets = [0, 96], sizes = [8, 32], strides = [1, 1]} : vector<8x128xf32> to vector<8x32xf32>
    %160 = arith.mulf %157, %143 : vector<8x32xf32>
    %161 = arith.mulf %156, %158 : vector<8x32xf32>
    %162 = arith.addf %160, %161 : vector<8x32xf32>
    %163 = math.tanh %162 : vector<8x32xf32>
    %164 = arith.mulf %159, %163 : vector<8x32xf32>
    %c56 = arith.constant 56 : index
    %c0_35 = arith.constant 0 : index
    %165 = vector.load %arg9[%c56, %c0_35] : memref<64x32xf32, #tpu.memory_space<vmem>>, vector<8x32xf32>
    tpu.vector_store %arg9[%c56, %c0_35], %164 {strides = array<i32>} : memref<64x32xf32, #tpu.memory_space<vmem>>, vector<8x32xf32>,
    %c0_36 = arith.constant 0 : index
    %c0_37 = arith.constant 0 : index
    %166 = vector.load %arg9[%c0_36, %c0_37] : memref<64x32xf32, #tpu.memory_space<vmem>>, vector<64x32xf32>
    %c0_38 = arith.constant 0 : index
    %c0_39 = arith.constant 0 : index
    %167 = vector.load %arg6[%c0_38, %c0_39] : memref<32x128xf32, #tpu.memory_space<vmem>>, vector<32x128xf32>
    %cst_40 = arith.constant dense<0.000000e+00> : vector<64x128xf32>
    %168 = tpu.matmul %166, %167, %cst_40 {dimension_numbers = #tpu.dot_dimension_numbers<[1], [0], [0], [1], [0, 0, 1, 1], [], []>} : vector<64x32xf32>, vector<32x128xf32>, vector<64x128xf32> -> vector<64x128xf32>
    %c0_41 = arith.constant 0 : index
    %c0_42 = arith.constant 0 : index
    %169 = vector.load %arg7[%c0_41, %c0_42] : memref<1x128xf32, #tpu.memory_space<vmem>>, vector<1x128xf32>
    %170 = vector.broadcast %169 : vector<1x128xf32> to vector<64x128xf32>
    %171 = arith.addf %168, %170 : vector<64x128xf32>
    %c0_43 = arith.constant 0 : index
    %c0_44 = arith.constant 0 : index
    %172 = vector.load %arg8[%c0_43, %c0_44] : memref<72x128xf32, #tpu.memory_space<vmem>>, vector<64x128xf32>
    tpu.vector_store %arg8[%c0_43, %c0_44], %171 {strides = array<i32>} : memref<72x128xf32, #tpu.memory_space<vmem>>, vector<64x128xf32>,
    %cst_45 = arith.constant 0.000000e+00 : f32
    %173 = vector.broadcast %cst_45 : f32 to vector<8x64xf32>
    %174 = tpu.concatenate %164, %162, %173 in 1 : vector<8x32xf32>, vector<8x32xf32>, vector<8x64xf32> -> vector<8x128xf32>
    %c64 = arith.constant 64 : index
    %c0_46 = arith.constant 0 : index
    %175 = vector.load %arg8[%c64, %c0_46] : memref<72x128xf32, #tpu.memory_space<vmem>>, vector<8x128xf32>
    tpu.vector_store %arg8[%c64, %c0_46], %174 {strides = array<i32>} : memref<72x128xf32, #tpu.memory_space<vmem>>, vector<8x128xf32>,
    return
  }
}

</mosaic_0001>

<bundles_post_ra>
// kernel: model_forward.1
= control target key start
LH: loop header
LB: loop body
LE: loop exit
PB: predicated region body
PF: predicated region fallthrough
CT: control target
= control target key end

     0   :  { %13 = vsyncpa [#allocation4], 0  ;;  %s2030_s0 = inlined_call_operand.vmem [shape: s32[64,1], index: 0, kind: input, shape index: {}]   ;;  %s2031_s1 = inlined_call_operand.vmem [shape: f32[8,32], index: 1, kind: input, shape index: {}]   ;;  %s2032_s2 = inlined_call_operand.vmem [shape: f32[8,32], index: 2, kind: input, shape index: {}]   ;;  %s2033_s3 = inlined_call_operand.vmem [shape: f32[64,128], index: 3, kind: input, shape index: {}]   ;;  %s2034_s4 = inlined_call_operand.hbm [shape: f32[32,128], index: 4, kind: input, shape index: {}]   ;;  %s2035_s5 = inlined_call_operand.hbm [shape: f32[1,128], index: 5, kind: input, shape index: {}]   ;;  %s2036_s6 = inlined_call_operand.hbm [shape: f32[32,128], index: 6, kind: input, shape index: {}]   ;;  %s2037_s7 = inlined_call_operand.hbm [shape: f32[1,128], index: 7, kind: input, shape index: {}]   ;;  %s2038_s8 = inlined_call_operand.vmem [shape: f32[72,128], index: 8, kind: output, shape index: {}]  }
   0x1   :  { %14 = vsyncpa [#allocation6], 0 }
   0x2   :  { %15 = vsyncpa [#allocation9], 0  ;;  %s1686_s27 = smov [#allocation5]   ;;  %s1687_s29 = smov [#allocation3]  }
   0x3   :  { %s42_s28 = sshll.u32 %s1686_s27, 4  ;;  %s29_s30 = sshll.u32 %s1687_s29, 4  ;;  %s43_s28 = int_to_ptr.vmem [resolvable:$true] %s42_s28  ;;  %s30_s30 = int_to_ptr.vmem [resolvable:$true] %s29_s30 }
   0x4   :  { %s1608_s9 = scalar_lea.vmem %s43_s28, 16  ;;  %s1612_s10 = scalar_lea.vmem %s43_s28, 32 }
   0x5   :  { %p1609_p0 = scmp.ne.s32.totalorder %s43_s28, %s1608_s9  ;;  %p1613_p1 = scmp.lt.s32.totalorder %s43_s28, %s43_s28 }
   0x6   :  { %p1614_p2 = scmp.lt.s32.totalorder %s1612_s10, %s1608_s9 }
   0x8   :  { %p1615_p3 = por %p1614_p2, %p1613_p1 }
   0xa   :  { %p1616_p4 = pnand %p1615_p3, %p1609_p0 }
   0xc   :  { %1619 = shalt.err (!%p1616_p4)
}
   0xd   :  { %45 = dma.hbm_to_vmem [thread:$0]  %s2035_s5, 16, %s43_s28, [#allocation6]  }
   0xe   :  { %s1628_s13 = scalar_lea.vmem %s30_s30, 512  ;;  %p1633_p6 = scmp.lt.s32.totalorder %s30_s30, %s30_s30 }
   0xf   :  { %p1629_p5 = scmp.ne.s32.totalorder %s30_s30, %s1628_s13  ;;  %p1634_p7 = scmp.lt.s32.totalorder %s1628_s13, %s1628_s13 }
  0x11   :  { %p1635_p8 = por %p1634_p7, %p1633_p6 }
  0x13   :  { %p1636_p9 = pnand %p1635_p8, %p1629_p5 }
  0x15   :  { %1639 = shalt.err (!%p1636_p9)
}
  0x16   :  { %s1688_s14 = smov 128   ;;  %s1689_s15 = smov 8  }
  0x17   :  { %35 = dma.hbm_to_vmem [thread:$0]  %s2034_s4, 512, %s30_s30, [#allocation4], %s1688_s14, %s1688_s14, %s1689_s15  }
  0x18   :  { %s1690_s18 = smov [#allocation7]   ;;  %s1691_s20 = smov [#allocation8]  }
  0x19   :  { %s51_s19 = sshll.u32 %s1690_s18, 4  ;;  %s64_s21 = sshll.u32 %s1691_s20, 4  ;;  %s52_s19 = int_to_ptr.vmem [resolvable:$true] %s51_s19  ;;  %s65_s21 = int_to_ptr.vmem [resolvable:$true] %s64_s21 }
  0x1a   :  { %s1648_s5 = scalar_lea.vmem %s52_s19, 512  ;;  %p1653_p11 = scmp.lt.s32.totalorder %s52_s19, %s52_s19 }
  0x1b   :  { %p1649_p10 = scmp.ne.s32.totalorder %s52_s19, %s1648_s5  ;;  %p1654_p12 = scmp.lt.s32.totalorder %s1648_s5, %s1648_s5 }
  0x1d   :  { %p1655_p13 = por %p1654_p12, %p1653_p11 }
  0x1f   :  { %p1656_p0 = pnand %p1655_p13, %p1649_p10 }
  0x21   :  { %1659 = shalt.err (!%p1656_p0)
}
  0x22   :  { %57 = dma.hbm_to_vmem [thread:$0]  %s2036_s6, 512, %s52_s19, [#allocation6], %s1688_s14, %s1688_s14, %s1689_s15  }
  0x23   :  { %s1668_s24 = scalar_lea.vmem %s65_s21, 16  ;;  %s1672_s4 = scalar_lea.vmem %s65_s21, 32 }
  0x24   :  { %p1669_p1 = scmp.ne.s32.totalorder %s65_s21, %s1668_s24  ;;  %p1673_p2 = scmp.lt.s32.totalorder %s65_s21, %s65_s21 }
  0x25   :  { %p1674_p3 = scmp.lt.s32.totalorder %s1672_s4, %s1668_s24 }
  0x27   :  { %p1675_p4 = por %p1674_p3, %p1673_p2 }
  0x29   :  { %p1676_p5 = pnand %p1675_p4, %p1669_p1 }
  0x2b   :  { %1679 = shalt.err (!%p1676_p5)
}
  0x2c   :  { %67 = dma.hbm_to_vmem [thread:$0]  %s2037_s7, 16, %s65_s21, [#allocation9]  }
  0x2d   :  { %1680 = dma.done.wait [#allocation4], 512  }
  0x2e   :  { %1681 = vsyncadd [#allocation4], 4294966784 }
  0x2f   :  { %1682 = dma.done.wait [#allocation6], 528  }
  0x30   :  { %1683 = vsyncadd [#allocation6], 4294966768 }
  0x31   :  { %1684 = dma.done.wait [#allocation9], 16  }
  0x32   :  { %1685 = vsyncadd [#allocation9], 4294967280  ;;  %v1692_v0 = vmov 0   ;;  %v1693_v1 = vmov 0.0   ;;  %v82_v2 = vld [vmem:[%s2030_s0 + $0x10] sm:$0xff]  ;;  %v80_v3 = vld [vmem:[%s2030_s0] sm:$0xff]  ;;  %v88_v23 = vlaneseq }
  0x33   :  { %1535 = vset.pattern.permute.xlu1 %v1692_v0  ;;  %1534 = vset.pattern.permute.xlu0 %v1692_v0  ;;  %v83_v4 = vld [vmem:[%s2030_s0 + $0x18] sm:$0xff]  ;;  %v81_v5 = vld [vmem:[%s2030_s0 + $0x8] sm:$0xff]  ;;  %v144_v7 = vld [vmem:[%s2033_s3 + $0x30] sm:$0xff]  ;;  %vm1694_vm0 = vmmov 0   ;;  %s1695_s10 = smov 32   ;;  %vm153_vm1 = vcmask 523264  }
  0x34   :  { %1426 = vmatprep.subr.mxu1 %v1693_v1  ;;  %97 = vperm.xlu1 %1535, %v82_v2   ;;  %v145_v6 = vld [vmem:[%s2033_s3 + $0x38] sm:$0xff]  ;;  %v143_v8 = vld [vmem:[%s2033_s3 + $0x28] sm:$0xff]  ;;  %v84_v11 = vld [vmem:[%s2030_s0 + $0x20] sm:$0xff]  ;;  %v89_v24 = vand.u32 127, %v88_v23  ;;  %vm289_vm10 = vcmask 261120  }
  0x35   :  { %91 = vperm.xlu0 %1534, %v80_v3   ;;  %1387 = vmatprep.subr.mxu0 %v145_v6  ;;  %v1776_v9 = vld [vmem:[#allocation3 + $0x18] sm:$0xff]  ;;  %v85_v10 = vld [vmem:[%s2030_s0 + $0x28] sm:$0xff]  ;;  %v1785_v12 = vld [vmem:[#allocation3 + $0x10] sm:$0xff] }
  0x36   :  { %1388 = vmatpush3.msra.mxu0 %v145_v6  ;;  %1427 = vmatpush3.msra.mxu1 %v1776_v9  ;;  %v142_v13 = vld [vmem:[%s2033_s3 + $0x20] sm:$0xff]  ;;  %v87_v14 = vld [vmem:[%s2030_s0 + $0x38] sm:$0xff]  ;;  %v86_v15 = vld [vmem:[%s2030_s0 + $0x30] sm:$0xff] }
  0x37   :  { %1389 = vmatprep.subr.mxu0 %v144_v7  ;;  %1428 = vmatprep.subr.mxu1 %v1693_v1  ;;  %v141_v16 = vld [vmem:[%s2033_s3 + $0x18] sm:$0xff]  ;;  %v1802_v17 = vld [vmem:[#allocation3 + $0x8] sm:$0xff]  ;;  %v140_v18 = vld [vmem:[%s2033_s3 + $0x10] sm:$0xff] }
  0x38   :  { %100 = vperm.xlu1 %1535, %v83_v4   ;;  %1390 = vmatpush3.msra.mxu0 %v144_v7  ;;  %v139_v19 = vld [vmem:[%s2033_s3 + $0x8] sm:$0xff]  ;;  %v1812_v20 = vld [vmem:[#allocation3] sm:$0xff] }
  0x39   :  { %94 = vperm.xlu0 %1534, %v81_v5   ;;  %1391 = vmatprep.subr.mxu0 %v143_v8  ;;  %v138_v21 = vld [vmem:[%s2033_s3] sm:$0xff] }
  0x3a   :  { %1429 = vmatpush3.msra.mxu1 %v1785_v12  ;;  %1392 = vmatpush3.msra.mxu0 %v143_v8  ;;  %v288_v22 = vld [vmem:[%s2032_s2] sm:$0xff] }
  0x3b   :  { %1430 = vmatprep.subr.mxu1 %v1693_v1  ;;  %1393 = vmatprep.subr.mxu0 %v142_v13  ;;  %v287_v41 = vld [vmem:[%s2031_s1] sm:$0xff]  ;;  %s1696_s1 = smov 64  }
  0x3c   :  { %106 = vperm.xlu1 %1535, %v85_v10   ;;  %1394 = vmatpush3.msra.mxu0 %v142_v13  ;;  %v1285_v42 = vld [vmem:[#allocation5] ss:$0 sm:$0xff] }
  0x3d   :  { %103 = vperm.xlu0 %1534, %v84_v11   ;;  %1431 = vmatpush3.msra.mxu1 %v1802_v17 }
  0x3e   :  { %1395 = vmatprep.subr.mxu0 %v141_v16  ;;  %1432 = vmatprep.subr.mxu1 %v1693_v1 }
  0x3f   :  { %1396 = vmatpush3.msra.mxu0 %v141_v16  ;;  %1433 = vmatpush3.msra.mxu1 %v1812_v20 }
  0x40   :  { %112 = vperm.xlu1 %1535, %v87_v14   ;;  %1397 = vmatprep.subr.mxu0 %v140_v18 }
  0x41   :  { %109 = vperm.xlu0 %1534, %v86_v15   ;;  %1398 = vmatpush3.msra.mxu0 %v140_v18 }
  0x42   :  { %1434 = vmatprep.mubr.msk.f32.mxu1 %vm1694_vm0, %v1693_v1  ;;  %1399 = vmatprep.subr.mxu0 %v139_v19 }
  0x43   :  { %1437 = vmatprep.subr.mxu1 %v1693_v1  ;;  %1400 = vmatpush3.msra.mxu0 %v139_v19 }
  0x44   :  { %1401 = vmatprep.subr.mxu0 %v138_v21  ;;  %372 = vrot.lane.b32.xlu1 %v288_v22, %s1695_s10 }
  0x45   :  { %1402 = vmatpush3.msra.mxu0 %v138_v21 }
  0x46   :  { %1415 = vmatprep.subr.mxu0 %v1693_v1 }
  0xaf   :  { %v98_v25 = vpop.permute.xlu1 %97 }
  0xb0   :  { %v92_v26 = vpop.permute.xlu0 %91  ;;  %vm116_vm3 = vcmp.eq.s32.totalorder %v98_v25, %v89_v24 }
  0xb1   :  { %vm114_vm2 = vcmp.eq.s32.totalorder %v92_v26, %v89_v24  ;;  %v1279_v30 = vsel %vm116_vm3, 1.0, %v1693_v1 }
  0xb2   :  { %v1277_v27 = vsel %vm114_vm2, 1.0, %v1693_v1 }
  0xb3   :  { %1403 = vmatprep.mubr.msk.f32.mxu0 %vm153_vm1, %v1277_v27  ;;  %v101_v28 = vpop.permute.xlu1 %100 }
  0xb4   :  { %v95_v29 = vpop.permute.xlu0 %94  ;;  %vm117_vm5 = vcmp.eq.s32.totalorder %v101_v28, %v89_v24 }
  0xb5   :  { %vm115_vm4 = vcmp.eq.s32.totalorder %v95_v29, %v89_v24  ;;  %v1280_v34 = vsel %vm117_vm5, 1.0, %v1693_v1 }
  0xb6   :  { %v1278_v31 = vsel %vm115_vm4, 1.0, %v1693_v1 }
  0xb7   :  { %1404 = vmatmul.mubr.msk.f32.vlgmr.msra.gmra.mxu0 %vm153_vm1, %v1278_v31  ;;  %v107_v32 = vpop.permute.xlu1 %106 }
  0xb8   :  { %1416 = vmatpush3.msra.mxu0 %v1776_v9  ;;  %1406 = vmatprep.mubr.msk.f32.mxu0 %vm153_vm1, %v1279_v30  ;;  %v104_v33 = vpop.permute.xlu0 %103  ;;  %vm119_vm7 = vcmp.eq.s32.totalorder %v107_v32, %v89_v24 }
  0xb9   :  { %vm118_vm6 = vcmp.eq.s32.totalorder %v104_v33, %v89_v24  ;;  %1417 = vmatprep.subr.mxu0 %v1693_v1  ;;  %v1282_v38 = vsel %vm119_vm7, 1.0, %v1693_v1 }
  0xba   :  { %v1281_v35 = vsel %vm118_vm6, 1.0, %v1693_v1  ;;  %1418 = vmatpush3.msra.mxu0 %v1785_v12 }
  0xbb   :  { %1407 = vmatmul.mubr.msk.f32.gmra.mxu0 %vm153_vm1, %v1280_v34  ;;  %1419 = vmatprep.subr.mxu0 %v1693_v1  ;;  %v113_v36 = vpop.permute.xlu1 %112 }
  0xbc   :  { %1409 = vmatprep.mubr.msk.f32.mxu0 %vm153_vm1, %v1281_v35  ;;  %v110_v37 = vpop.permute.xlu0 %109  ;;  %1420 = vmatpush3.msra.mxu0 %v1802_v17  ;;  %vm121_vm9 = vcmp.eq.s32.totalorder %v113_v36, %v89_v24 }
  0xbd   :  { %vm120_vm8 = vcmp.eq.s32.totalorder %v110_v37, %v89_v24  ;;  %1421 = vmatprep.subr.mxu0 %v1693_v1  ;;  %v1284_v40 = vsel %vm121_vm9, 1.0, %v1693_v1 }
  0xbe   :  { %v1283_v39 = vsel %vm120_vm8, 1.0, %v1693_v1  ;;  %1422 = vmatpush3.msra.mxu0 %v1812_v20 }
  0xbf   :  { %1410 = vmatmul.mubr.msk.f32.gmra.mxu0 %vm153_vm1, %v1282_v38  ;;  %1448 = vmatprep.subr.mxu0 %v1693_v1  ;;  %v373_v6 = vpop.permute.xlu1 %372 }
  0xc0   :  { %1412 = vmatprep.mubr.msk.f32.mxu0 %vm153_vm1, %v1283_v39 }
  0xc3   :  { %1413 = vmatmul.mubr.msk.f32.gmra.mxu0 %vm153_vm1, %v1284_v40 }
  0xc4   :  { %1423 = vmatprep.mubr.msk.f32.mxu0 %vm1694_vm0, %v1693_v1 }
  0xc7   :  { %1424 = vmatmul.mubr.msk.f32.vlgmr.msra.gmra.mxu0 %vm289_vm10, %v287_v41 }
  0xc8   :  { %1449 = vmatpush3.msra.mxu0 %v1776_v9  ;;  %1456 = vmatprep.mubr.msk.f32.mxu0 %vm1694_vm0, %v1693_v1 }
  0xc9   :  { %1450 = vmatprep.subr.mxu0 %v1693_v1 }
  0xca   :  { %1451 = vmatpush3.msra.mxu0 %v1785_v12 }
  0xcb   :  { %1452 = vmatprep.subr.mxu0 %v1693_v1 }
  0xcc   :  { %1453 = vmatpush3.msra.mxu0 %v1802_v17 }
  0xcd   :  { %1454 = vmatprep.subr.mxu0 %v1693_v1 }
  0xce   :  { %1455 = vmatpush3.msra.mxu0 %v1812_v20 }
  0xcf   :  { %1470 = vmatprep.subr.mxu0 %v1693_v1 }
 0x177   :  { %v1405_v43 = vpop.f32.mrf.mxu0 }
 0x178   :  { %v250_v44 = vadd.f32 %v1405_v43, %v1285_v42 }
 0x179   :  { %v244_v45 = vpop.f32.mrf.mxu0 }
 0x17a   :  { %v245_v57 = vadd.f32 %v1285_v42, %v244_v45 }
 0x17b   :  { %v1408_v46 = vpop.f32.mrf.mxu0 }
 0x17c   :  { %v1866_v47 = vadd.f32 %v1408_v46, %v1285_v42 }
 0x17d   :  { %v254_v48 = vpop.f32.mrf.mxu0 }
 0x17e   :  { %v1868_v49 = vadd.f32 %v1285_v42, %v254_v48 }
 0x17f   :  { %v1411_v50 = vpop.f32.mrf.mxu0 }
 0x180   :  { %v1870_v51 = vadd.f32 %v1411_v50, %v1285_v42 }
 0x181   :  { %v264_v52 = vpop.f32.mrf.mxu0 }
 0x182   :  { %v1872_v53 = vadd.f32 %v1285_v42, %v264_v52 }
 0x183   :  { %v1414_v54 = vpop.f32.mrf.mxu0 }
 0x184   :  { %v1874_v55 = vadd.f32 %v1414_v54, %v1285_v42 }
 0x185   :  { %v274_v56 = vpop.f32.mrf.mxu0 }
 0x186   :  { %v1876_v58 = vadd.f32 %v1285_v42, %v274_v56 }
 0x187   :  { %v359_v59 = vpop.f32.mrf.mxu0 }
 0x188   :  { %v363_v60 = vadd.f32 %v359_v59, %v245_v57 }
 0x189   :  { %v1425_v61 = vpop.f32.mrf.mxu0 }
 0x18a   :  { %1536 = vtanh.f32 %v363_v60  ;;  %v1295_v63 = vmul.f32 -1.442695, %v363_v60 }
 0x18c   :  { %1538 = vpow2.f32 %v1295_v63 }
 0x197   :  { %v1537_v62 = vpop.eup %1536 }
 0x198   :  { %377 = vrot.lane.b32.xlu0 %v1537_v62, %s1696_s1 }
 0x199   :  { %v1539_v0 = vpop.eup %1538 }
 0x19a   :  { %v367_v2 = vadd.f32 1.0, %v1539_v0 }
 0x19c   :  { %1540 = vrcp.f32 %v367_v2 }
 0x1a9   :  { %v1541_v3 = vpop.eup %1540 }
 0x1aa   :  { %v375_v7 = vmul.f32 %v1541_v3, %v373_v6 }
 0x20a   :  { %v378_v4 = vpop.permute.xlu0 %377 }
 0x20b   :  { %v380_v5 = vmul.f32 %v1541_v3, %v378_v4 }
 0x20d   :  { %382 = vrot.lane.b32.xlu0 %v380_v5, %s1695_s10 }
 0x27f   :  { %v383_v8 = vpop.permute.xlu0 %382 }
 0x280   :  { %v385_v10 = vadd.f32 %v383_v8, %v375_v7 }
 0x282   :  { %1542 = vtanh.f32 %v385_v10 }
 0x28f   :  { %v1543_v11 = vpop.eup %1542 }
 0x290   :  { %388 = vrot.lane.b32.xlu1 %v1543_v11, %s1696_s1 }
 0x302   :  { %v389_v13 = vpop.permute.xlu1 %388 }
 0x303   :  { %v391_v14 = vmul.f32 %v1541_v3, %v389_v13 }
 0x305   :  { %393 = vrot.lane.b32.xlu0 %v391_v14, %s1695_s10 }
 0x377   :  { %v394_v15 = vpop.permute.xlu0 %393 }
 0x378   :  { %396 = vst.msk [vmem:[#allocation2] sm:$0xff] %vm289_vm10, %v394_v15  ;;  %1435 = vmatmul.mubr.msk.f32.vlgmr.msra.gmra.mxu1 %vm289_vm10, %v394_v15 }
 0x379   :  { %1438 = vmatpush3.msra.mxu1 %v1776_v9  ;;  %1445 = vmatprep.mubr.msk.f32.mxu1 %vm1694_vm0, %v1693_v1 }
 0x37a   :  { %1439 = vmatprep.subr.mxu1 %v1693_v1 }
 0x37b   :  { %1440 = vmatpush3.msra.mxu1 %v1785_v12 }
 0x37c   :  { %1441 = vmatprep.subr.mxu1 %v1693_v1 }
 0x37d   :  { %1442 = vmatpush3.msra.mxu1 %v1802_v17 }
 0x37e   :  { %1443 = vmatprep.subr.mxu1 %v1693_v1 }
 0x37f   :  { %1444 = vmatpush3.msra.mxu1 %v1812_v20 }
 0x380   :  { %1459 = vmatprep.subr.mxu1 %v1693_v1 }
 0x438   :  { %v465_v16 = vpop.f32.mrf.mxu1 }
 0x439   :  { %v469_v18 = vadd.f32 %v465_v16, %v250_v44 }
 0x43a   :  { %v1436_v19 = vpop.f32.mrf.mxu1 }
 0x43b   :  { %1544 = vtanh.f32 %v469_v18  ;;  %v1297_v22 = vmul.f32 -1.442695, %v469_v18 }
 0x43d   :  { %1546 = vpow2.f32 %v1297_v22 }
 0x448   :  { %v1545_v21 = vpop.eup %1544 }
 0x449   :  { %479 = vrot.lane.b32.xlu1 %v1545_v21, %s1696_s1 }
 0x44a   :  { %v1547_v23 = vpop.eup %1546 }
 0x44b   :  { %v473_v24 = vadd.f32 1.0, %v1547_v23 }
 0x44d   :  { %1548 = vrcp.f32 %v473_v24 }
 0x45a   :  { %v1549_v25 = vpop.eup %1548 }
 0x45b   :  { %v477_v28 = vmul.f32 %v1549_v25, %v385_v10 }
 0x4bb   :  { %v480_v26 = vpop.permute.xlu1 %479 }
 0x4bc   :  { %v482_v27 = vmul.f32 %v1549_v25, %v480_v26 }
 0x4be   :  { %484 = vrot.lane.b32.xlu0 %v482_v27, %s1695_s10 }
 0x530   :  { %v485_v29 = vpop.permute.xlu0 %484 }
 0x531   :  { %v487_v30 = vadd.f32 %v485_v29, %v477_v28 }
 0x533   :  { %1550 = vtanh.f32 %v487_v30 }
 0x540   :  { %v1551_v31 = vpop.eup %1550 }
 0x541   :  { %490 = vrot.lane.b32.xlu1 %v1551_v31, %s1696_s1 }
 0x5b3   :  { %v491_v32 = vpop.permute.xlu1 %490 }
 0x5b4   :  { %v493_v33 = vmul.f32 %v1549_v25, %v491_v32 }
 0x5b6   :  { %495 = vrot.lane.b32.xlu0 %v493_v33, %s1695_s10 }
 0x628   :  { %v496_v34 = vpop.permute.xlu0 %495 }
 0x629   :  { %498 = vst.msk [vmem:[#allocation2 + $0x8] sm:$0xff] %vm289_vm10, %v496_v34  ;;  %1446 = vmatmul.mubr.msk.f32.vlgmr.msra.gmra.mxu1 %vm289_vm10, %v496_v34 }
 0x62a   :  { %1460 = vmatpush3.msra.mxu1 %v1776_v9  ;;  %1467 = vmatprep.mubr.msk.f32.mxu1 %vm1694_vm0, %v1693_v1 }
 0x62b   :  { %1461 = vmatprep.subr.mxu1 %v1693_v1 }
 0x62c   :  { %1462 = vmatpush3.msra.mxu1 %v1785_v12 }
 0x62d   :  { %1463 = vmatprep.subr.mxu1 %v1693_v1 }
 0x62e   :  { %1464 = vmatpush3.msra.mxu1 %v1802_v17 }
 0x62f   :  { %1465 = vmatprep.subr.mxu1 %v1693_v1 }
 0x630   :  { %1466 = vmatpush3.msra.mxu1 %v1812_v20 }
 0x631   :  { %1481 = vmatprep.subr.mxu1 %v1693_v1 }
 0x6e9   :  { %v567_v35 = vpop.f32.mrf.mxu1 }
 0x6ea   :  { %v571_v36 = vadd.f32 %v567_v35, %v1868_v49 }
 0x6eb   :  { %v1447_v37 = vpop.f32.mrf.mxu1 }
 0x6ec   :  { %1552 = vtanh.f32 %v571_v36  ;;  %v1299_v39 = vmul.f32 -1.442695, %v571_v36 }
 0x6ee   :  { %1554 = vpow2.f32 %v1299_v39 }
 0x6f9   :  { %v1553_v38 = vpop.eup %1552 }
 0x6fa   :  { %581 = vrot.lane.b32.xlu1 %v1553_v38, %s1696_s1 }
 0x6fb   :  { %v1555_v40 = vpop.eup %1554 }
 0x6fc   :  { %v575_v41 = vadd.f32 1.0, %v1555_v40 }
 0x6fe   :  { %1556 = vrcp.f32 %v575_v41 }
 0x70b   :  { %v1557_v42 = vpop.eup %1556 }
 0x70c   :  { %v579_v45 = vmul.f32 %v1557_v42, %v487_v30 }
 0x76c   :  { %v582_v43 = vpop.permute.xlu1 %581 }
 0x76d   :  { %v584_v44 = vmul.f32 %v1557_v42, %v582_v43  ;;  %v1111_v43 = vld [vmem:[#allocation2] sm:$0xff] }
 0x76f   :  { %586 = vrot.lane.b32.xlu0 %v584_v44, %s1695_s10  ;;  %v1120_v44 = vld [vmem:[#allocation7 + $0x8] sm:$0xff] }
 0x7e1   :  { %v587_v46 = vpop.permute.xlu0 %586 }
 0x7e2   :  { %v589_v48 = vadd.f32 %v587_v46, %v579_v45  ;;  %v1119_v45 = vld [vmem:[#allocation7] sm:$0xff] }
 0x7e3   :  { %v1112_v46 = vld [vmem:[#allocation2 + $0x8] sm:$0xff] }
 0x7e4   :  { %1558 = vtanh.f32 %v589_v48 }
 0x7f1   :  { %v1559_v49 = vpop.eup %1558 }
 0x7f2   :  { %592 = vrot.lane.b32.xlu1 %v1559_v49, %s1696_s1 }
 0x864   :  { %v593_v50 = vpop.permute.xlu1 %592 }
 0x865   :  { %v595_v52 = vmul.f32 %v1557_v42, %v593_v50  ;;  %v1121_v42 = vld [vmem:[#allocation7 + $0x10] sm:$0xff] }
 0x867   :  { %597 = vrot.lane.b32.xlu0 %v595_v52, %s1695_s10 }
 0x8d9   :  { %v598_v54 = vpop.permute.xlu0 %597 }
 0x8da   :  { %600 = vst.msk [vmem:[#allocation2 + $0x10] sm:$0xff] %vm289_vm10, %v598_v54  ;;  %1457 = vmatmul.mubr.msk.f32.vlgmr.msra.gmra.mxu0 %vm289_vm10, %v598_v54 }
 0x8db   :  { %1471 = vmatpush3.msra.mxu0 %v1776_v9  ;;  %1478 = vmatprep.mubr.msk.f32.mxu0 %vm1694_vm0, %v1693_v1 }
 0x8dc   :  { %1472 = vmatprep.subr.mxu0 %v1693_v1 }
 0x8dd   :  { %1473 = vmatpush3.msra.mxu0 %v1785_v12 }
 0x8de   :  { %1474 = vmatprep.subr.mxu0 %v1693_v1 }
 0x8df   :  { %1475 = vmatpush3.msra.mxu0 %v1802_v17 }
 0x8e0   :  { %1476 = vmatprep.subr.mxu0 %v1693_v1 }
 0x8e1   :  { %1477 = vmatpush3.msra.mxu0 %v1812_v20 }
 0x8e2   :  { %1492 = vmatprep.subr.mxu0 %v1693_v1 }
 0x99a   :  { %v669_v56 = vpop.f32.mrf.mxu0 }
 0x99b   :  { %v673_v57 = vadd.f32 %v669_v56, %v1866_v47 }
 0x99c   :  { %v1458_v59 = vpop.f32.mrf.mxu0 }
 0x99d   :  { %1560 = vtanh.f32 %v673_v57  ;;  %v1301_v61 = vmul.f32 -1.442695, %v673_v57  ;;  %v1976_v59 = vld [vmem:[#allocation8] ss:$0 sm:$0xff] }
 0x99f   :  { %1562 = vpow2.f32 %v1301_v61 }
 0x9aa   :  { %v1561_v60 = vpop.eup %1560 }
 0x9ab   :  { %683 = vrot.lane.b32.xlu1 %v1561_v60, %s1696_s1 }
 0x9ac   :  { %v1563_v62 = vpop.eup %1562 }
 0x9ad   :  { %v677_v63 = vadd.f32 1.0, %v1563_v62 }
 0x9af   :  { %1564 = vrcp.f32 %v677_v63 }
 0x9bc   :  { %v1565_v0 = vpop.eup %1564 }
 0x9bd   :  { %v681_v4 = vmul.f32 %v1565_v0, %v589_v48  ;;  %v1113_v48 = vld [vmem:[#allocation2 + $0x10] sm:$0xff] }
 0xa1d   :  { %v684_v2 = vpop.permute.xlu1 %683 }
 0xa1e   :  { %v686_v3 = vmul.f32 %v1565_v0, %v684_v2 }
 0xa20   :  { %688 = vrot.lane.b32.xlu0 %v686_v3, %s1695_s10 }
 0xa92   :  { %v689_v5 = vpop.permute.xlu0 %688 }
 0xa93   :  { %v691_v6 = vadd.f32 %v689_v5, %v681_v4 }
 0xa95   :  { %1566 = vtanh.f32 %v691_v6 }
 0xaa2   :  { %v1567_v47 = vpop.eup %1566 }
 0xaa3   :  { %694 = vrot.lane.b32.xlu1 %v1567_v47, %s1696_s1 }
 0xb15   :  { %v695_v7 = vpop.permute.xlu1 %694 }
 0xb16   :  { %v697_v8 = vmul.f32 %v1565_v0, %v695_v7 }
 0xb18   :  { %699 = vrot.lane.b32.xlu0 %v697_v8, %s1695_s10 }
 0xb8a   :  { %v700_v10 = vpop.permute.xlu0 %699 }
 0xb8b   :  { %702 = vst.msk [vmem:[#allocation2 + $0x18] sm:$0xff] %vm289_vm10, %v700_v10  ;;  %1468 = vmatmul.mubr.msk.f32.vlgmr.msra.gmra.mxu1 %vm289_vm10, %v700_v10 }
 0xb8c   :  { %1482 = vmatpush3.msra.mxu1 %v1776_v9  ;;  %1489 = vmatprep.mubr.msk.f32.mxu1 %vm1694_vm0, %v1693_v1 }
 0xb8d   :  { %1483 = vmatprep.subr.mxu1 %v1693_v1 }
 0xb8e   :  { %1484 = vmatpush3.msra.mxu1 %v1785_v12 }
 0xb8f   :  { %1485 = vmatprep.subr.mxu1 %v1693_v1 }
 0xb90   :  { %1486 = vmatpush3.msra.mxu1 %v1802_v17 }
 0xb91   :  { %1487 = vmatprep.subr.mxu1 %v1693_v1 }
 0xb92   :  { %1488 = vmatpush3.msra.mxu1 %v1812_v20  ;;  %v1114_v49 = vld [vmem:[#allocation2 + $0x18] sm:$0xff] }
 0xc4b   :  { %v771_v11 = vpop.f32.mrf.mxu1 }
 0xc4c   :  { %v775_v13 = vadd.f32 %v771_v11, %v1872_v53 }
 0xc4d   :  { %v1469_v14 = vpop.f32.mrf.mxu1 }
 0xc4e   :  { %1568 = vtanh.f32 %v775_v13  ;;  %v1303_v16 = vmul.f32 -1.442695, %v775_v13 }
 0xc50   :  { %1570 = vpow2.f32 %v1303_v16 }
 0xc5b   :  { %v1569_v15 = vpop.eup %1568 }
 0xc5c   :  { %785 = vrot.lane.b32.xlu1 %v1569_v15, %s1696_s1 }
 0xc5d   :  { %v1571_v18 = vpop.eup %1570 }
 0xc5e   :  { %v779_v19 = vadd.f32 1.0, %v1571_v18 }
 0xc60   :  { %1572 = vrcp.f32 %v779_v19 }
 0xc6d   :  { %v1573_v21 = vpop.eup %1572 }
 0xc6e   :  { %v783_v24 = vmul.f32 %v1573_v21, %v691_v6 }
 0xcce   :  { %v786_v22 = vpop.permute.xlu1 %785 }
 0xccf   :  { %v788_v23 = vmul.f32 %v1573_v21, %v786_v22 }
 0xcd1   :  { %790 = vrot.lane.b32.xlu0 %v788_v23, %s1695_s10 }
 0xd43   :  { %v791_v25 = vpop.permute.xlu0 %790 }
 0xd44   :  { %v793_v26 = vadd.f32 %v791_v25, %v783_v24 }
 0xd46   :  { %1574 = vtanh.f32 %v793_v26 }
 0xd53   :  { %v1575_v53 = vpop.eup %1574 }
 0xd54   :  { %796 = vrot.lane.b32.xlu1 %v1575_v53, %s1696_s1 }
 0xdc6   :  { %v797_v27 = vpop.permute.xlu1 %796 }
 0xdc7   :  { %v799_v28 = vmul.f32 %v1573_v21, %v797_v27 }
 0xdc9   :  { %801 = vrot.lane.b32.xlu0 %v799_v28, %s1695_s10 }
 0xe3b   :  { %v802_v29 = vpop.permute.xlu0 %801 }
 0xe3c   :  { %804 = vst.msk [vmem:[#allocation2 + $0x20] sm:$0xff] %vm289_vm10, %v802_v29  ;;  %1479 = vmatmul.mubr.msk.f32.vlgmr.msra.gmra.mxu0 %vm289_vm10, %v802_v29 }
 0xe3d   :  { %1493 = vmatpush3.msra.mxu0 %v1776_v9  ;;  %1500 = vmatprep.mubr.msk.f32.mxu0 %vm1694_vm0, %v1693_v1 }
 0xe3e   :  { %1494 = vmatprep.subr.mxu0 %v1693_v1 }
 0xe3f   :  { %1495 = vmatpush3.msra.mxu0 %v1785_v12 }
 0xe40   :  { %1496 = vmatprep.subr.mxu0 %v1693_v1 }
 0xe41   :  { %1497 = vmatpush3.msra.mxu0 %v1802_v17 }
 0xe42   :  { %1498 = vmatprep.subr.mxu0 %v1693_v1 }
 0xe43   :  { %1499 = vmatpush3.msra.mxu0 %v1812_v20  ;;  %v1115_v50 = vld [vmem:[#allocation2 + $0x20] sm:$0xff] }
 0xefc   :  { %v873_v30 = vpop.f32.mrf.mxu0 }
 0xefd   :  { %v877_v31 = vadd.f32 %v873_v30, %v1870_v51  ;;  %v1122_v51 = vld [vmem:[#allocation7 + $0x18] sm:$0xff] }
 0xefe   :  { %v1480_v32 = vpop.f32.mrf.mxu0  ;;  %1503 = vmatprep.subr.mxu1 %v1122_v51 }
 0xeff   :  { %1576 = vtanh.f32 %v877_v31  ;;  %v1305_v33 = vmul.f32 -1.442695, %v877_v31 }
 0xf01   :  { %1578 = vpow2.f32 %v1305_v33 }
 0xf0c   :  { %v1577_v9 = vpop.eup %1576 }
 0xf0d   :  { %887 = vrot.lane.b32.xlu1 %v1577_v9, %s1696_s1 }
 0xf0e   :  { %v1579_v34 = vpop.eup %1578 }
 0xf0f   :  { %v881_v12 = vadd.f32 1.0, %v1579_v34 }
 0xf11   :  { %1580 = vrcp.f32 %v881_v12 }
 0xf1e   :  { %v1581_v35 = vpop.eup %1580 }
 0xf1f   :  { %v885_v1 = vmul.f32 %v1581_v35, %v793_v26 }
 0xf7f   :  { %v888_v36 = vpop.permute.xlu1 %887 }
 0xf80   :  { %v890_v17 = vmul.f32 %v1581_v35, %v888_v36 }
 0xf82   :  { %892 = vrot.lane.b32.xlu0 %v890_v17, %s1695_s10 }
 0xff4   :  { %v893_v20 = vpop.permute.xlu0 %892 }
 0xff5   :  { %v1962_v37 = vadd.f32 %v893_v20, %v885_v1 }
 0xff7   :  { %1582 = vtanh.f32 %v1962_v37 }
0x1004   :  { %v1583_v38 = vpop.eup %1582 }
0x1005   :  { %898 = vrot.lane.b32.xlu1 %v1583_v38, %s1696_s1 }
0x1077   :  { %v899_v39 = vpop.permute.xlu1 %898 }
0x1078   :  { %v901_v40 = vmul.f32 %v1581_v35, %v899_v39 }
0x107a   :  { %903 = vrot.lane.b32.xlu0 %v901_v40, %s1695_s10 }
0x10ec   :  { %v904_v41 = vpop.permute.xlu0 %903 }
0x10ed   :  { %906 = vst.msk [vmem:[#allocation2 + $0x28] sm:$0xff] %vm289_vm10, %v904_v41  ;;  %1490 = vmatmul.mubr.msk.f32.vlgmr.msra.gmra.mxu1 %vm289_vm10, %v904_v41 }
0x10ee   :  { %1504 = vmatpush3.msra.mxu1 %v1122_v51  ;;  %1511 = vmatprep.mubr.msk.f32.mxu1 %vm289_vm10, %v1111_v43 }
0x10ef   :  { %1505 = vmatprep.subr.mxu1 %v1121_v42 }
0x10f0   :  { %1506 = vmatpush3.msra.mxu1 %v1121_v42 }
0x10f1   :  { %1507 = vmatprep.subr.mxu1 %v1120_v44 }
0x10f2   :  { %1508 = vmatpush3.msra.mxu1 %v1120_v44 }
0x10f3   :  { %1509 = vmatprep.subr.mxu1 %v1119_v45 }
0x10f4   :  { %1510 = vmatpush3.msra.mxu1 %v1119_v45  ;;  %v1116_v52 = vld [vmem:[#allocation2 + $0x28] sm:$0xff] }
0x10f5   :  { %1512 = vmatmul.mubr.msk.f32.vlgmr.msra.gmra.mxu1 %vm289_vm10, %v1112_v46 }
0x10f6   :  { %1514 = vmatprep.mubr.msk.f32.mxu1 %vm289_vm10, %v1113_v48 }
0x10f9   :  { %1515 = vmatmul.mubr.msk.f32.gmra.mxu1 %vm289_vm10, %v1114_v49 }
0x10fa   :  { %1517 = vmatprep.mubr.msk.f32.mxu1 %vm289_vm10, %v1115_v50 }
0x10fd   :  { %1518 = vmatmul.mubr.msk.f32.gmra.mxu1 %vm289_vm10, %v1116_v52 }
0x11ad   :  { %v975_v54 = vpop.f32.mrf.mxu1 }
0x11ae   :  { %v979_v56 = vadd.f32 %v975_v54, %v1876_v58 }
0x11af   :  { %v1491_v57 = vpop.f32.mrf.mxu1 }
0x11b0   :  { %1584 = vtanh.f32 %v979_v56  ;;  %v1307_v8 = vmul.f32 -1.442695, %v979_v56 }
0x11b2   :  { %1586 = vpow2.f32 %v1307_v8 }
0x11b5   :  { %v1513_v60 = vpop.f32.mrf.mxu1 }
0x11b6   :  { %v1226_v61 = vadd.f32 %v1513_v60, %v1976_v59 }
0x11b7   :  { %v1220_v62 = vpop.f32.mrf.mxu1 }
0x11b8   :  { %1260 = vst [vmem:[%s2038_s8 + $0x8] sm:$0xff] %v1226_v61  ;;  %v1221_v63 = vadd.f32 %v1976_v59, %v1220_v62 }
0x11b9   :  { %v1516_v0 = vpop.f32.mrf.mxu1 }
0x11ba   :  { %1259 = vst [vmem:[%s2038_s8] sm:$0xff] %v1221_v63  ;;  %v1236_v58 = vadd.f32 %v1516_v0, %v1976_v59 }
0x11bb   :  { %v1230_v2 = vpop.f32.mrf.mxu1 }
0x11bc   :  { %1262 = vst [vmem:[%s2038_s8 + $0x18] sm:$0xff] %v1236_v58  ;;  %v1231_v3 = vadd.f32 %v1976_v59, %v1230_v2 }
0x11bd   :  { %v1585_v4 = vpop.eup %1584  ;;  %v1519_v5 = vpop.f32.mrf.mxu1 }
0x11be   :  { %1261 = vst [vmem:[%s2038_s8 + $0x10] sm:$0xff] %v1231_v3  ;;  %v1246_v6 = vadd.f32 %v1519_v5, %v1976_v59  ;;  %989 = vrot.lane.b32.xlu1 %v1585_v4, %s1696_s1 }
0x11bf   :  { %v1240_v47 = vpop.f32.mrf.mxu1  ;;  %v1587_v10 = vpop.eup %1586 }
0x11c0   :  { %1264 = vst [vmem:[%s2038_s8 + $0x28] sm:$0xff] %v1246_v6  ;;  %v1241_v7 = vadd.f32 %v1976_v59, %v1240_v47  ;;  %v983_v11 = vadd.f32 1.0, %v1587_v10 }
0x11c2   :  { %1263 = vst [vmem:[%s2038_s8 + $0x20] sm:$0xff] %v1241_v7  ;;  %1588 = vrcp.f32 %v983_v11 }
0x11cf   :  { %v1589_v13 = vpop.eup %1588 }
0x11d0   :  { %v987_v16 = vmul.f32 %v1589_v13, %v1962_v37 }
0x1230   :  { %v990_v14 = vpop.permute.xlu1 %989 }
0x1231   :  { %v992_v15 = vmul.f32 %v1589_v13, %v990_v14 }
0x1233   :  { %994 = vrot.lane.b32.xlu0 %v992_v15, %s1695_s10 }
0x12a5   :  { %v995_v18 = vpop.permute.xlu0 %994 }
0x12a6   :  { %v997_v19 = vadd.f32 %v995_v18, %v987_v16 }
0x12a8   :  { %1590 = vtanh.f32 %v997_v19 }
0x12b5   :  { %v1591_v21 = vpop.eup %1590 }
0x12b6   :  { %1000 = vrot.lane.b32.xlu1 %v1591_v21, %s1696_s1 }
0x1328   :  { %v1001_v22 = vpop.permute.xlu1 %1000 }
0x1329   :  { %v1003_v23 = vmul.f32 %v1589_v13, %v1001_v22 }
0x132b   :  { %1005 = vrot.lane.b32.xlu0 %v1003_v23, %s1695_s10 }
0x139d   :  { %v1006_v24 = vpop.permute.xlu0 %1005 }
0x139e   :  { %1008 = vst.msk [vmem:[#allocation2 + $0x30] sm:$0xff] %vm289_vm10, %v1006_v24  ;;  %1501 = vmatmul.mubr.msk.f32.vlgmr.msra.gmra.mxu0 %vm289_vm10, %v1006_v24 }
0x13a5   :  { %v1117_v25 = vld [vmem:[#allocation2 + $0x30] sm:$0xff] }
0x13a6   :  { %1520 = vmatprep.mubr.msk.f32.mxu1 %vm289_vm10, %v1117_v25 }
0x145e   :  { %v1077_v26 = vpop.f32.mrf.mxu0 }
0x145f   :  { %v1081_v53 = vadd.f32 %v1077_v26, %v1874_v55 }
0x1460   :  { %v1502_v27 = vpop.f32.mrf.mxu0 }
0x1461   :  { %1592 = vtanh.f32 %v1081_v53  ;;  %v1309_v29 = vmul.f32 -1.442695, %v1081_v53 }
0x1463   :  { %1594 = vpow2.f32 %v1309_v29 }
0x146e   :  { %v1593_v28 = vpop.eup %1592 }
0x146f   :  { %1091 = vrot.lane.b32.xlu1 %v1593_v28, %s1696_s1 }
0x1470   :  { %v1595_v30 = vpop.eup %1594 }
0x1471   :  { %v1085_v31 = vadd.f32 1.0, %v1595_v30 }
0x1473   :  { %1596 = vrcp.f32 %v1085_v31 }
0x1480   :  { %v1597_v32 = vpop.eup %1596 }
0x1481   :  { %v1089_v34 = vmul.f32 %v1597_v32, %v997_v19 }
0x14e1   :  { %v1092_v9 = vpop.permute.xlu1 %1091 }
0x14e2   :  { %v1094_v33 = vmul.f32 %v1597_v32, %v1092_v9 }
0x14e4   :  { %1096 = vrot.lane.b32.xlu0 %v1094_v33, %s1695_s10 }
0x1556   :  { %v1097_v12 = vpop.permute.xlu0 %1096 }
0x1557   :  { %v1099_v35 = vadd.f32 %v1097_v12, %v1089_v34 }
0x1559   :  { %1598 = vtanh.f32 %v1099_v35 }
0x1566   :  { %v1599_v55 = vpop.eup %1598 }
0x1567   :  { %1102 = vrot.lane.b32.xlu1 %v1599_v55, %s1696_s1 }
0x15d9   :  { %v1103_v36 = vpop.permute.xlu1 %1102 }
0x15da   :  { %v1105_v17 = vmul.f32 %v1597_v32, %v1103_v36 }
0x15dc   :  { %1107 = vrot.lane.b32.xlu0 %v1105_v17, %s1695_s10 }
0x164e   :  { %v1108_v1 = vpop.permute.xlu0 %1107 }
0x164f   :  { %1110 = vst.msk [vmem:[#allocation2 + $0x38] sm:$0xff] %vm289_vm10, %v1108_v1  ;;  %v1267_v20 = vsel %vm289_vm10, %v1108_v1, %v1099_v35 }
0x1650   :  { %v1268_v37 = vsel %vm153_vm1, %v1267_v20, 0.0 }
0x1651   :  { %1269 = vst [vmem:[%s2038_s8 + $0x40] sm:$0xff] %v1268_v37 }
0x1656   :  { %v1118_v51 = vld [vmem:[#allocation2 + $0x38] sm:$0xff] }
0x1657   :  { %1521 = vmatmul.mubr.msk.f32.gmra.mxu1 %vm289_vm10, %v1118_v51 }
0x1717   :  { %v1522_v38 = vpop.f32.mrf.mxu1 }
0x1718   :  { %v1256_v39 = vadd.f32 %v1522_v38, %v1976_v59 }
0x1719   :  { %v1250_v40 = vpop.f32.mrf.mxu1 }
0x171a   :  { %1266 = vst [vmem:[%s2038_s8 + $0x38] sm:$0xff] %v1256_v39  ;;  %v1251_v41 = vadd.f32 %v1976_v59, %v1250_v40 }
0x171c   :  { %1265 = vst [vmem:[%s2038_s8 + $0x30] sm:$0xff] %v1251_v41 }
0x171d   :  { %1274 = vsyncpa [#allocation4], 1 }
0x171e   :  { %1275 = vsyncpa [#allocation6], 1 }
0x171f   :  { %1276 = vsyncpa [#allocation9], 1 }

</bundles_post_ra>
